<compile_context>
chip_gen: v7x
topology: tpu7x:2x2x1
jax: 0.10.0
libtpu: 0.0.40
codegen_flags: <defaults>
</compile_context>

<pallas_src>
import functools

import jax
import jax.numpy as jnp
from jax.experimental import pallas as pl
from jax.experimental.pallas import tpu as pltpu


def _cdiv(a, b):
    return -(-a // b)


def _round_up(a, m):
    return _cdiv(a, m) * m


# ----------------------------------------------------------------------------- kernels


def _resident_kernel(x_ref, w1_ref, b1_ref, w2_ref, b2_ref, o_ref):
    """One (tm, D) batch tile; full (D, D) weights resident in VMEM.

    o = x + relu(x @ W1 + b1) @ W2 + b2        (W1, W2 already in (in, out) layout)
    """
    x = x_ref[...]                                                    # (tm, D)
    h = jnp.dot(x.astype(w1_ref.dtype), w1_ref[...],
                preferred_element_type=jnp.float32)                   # (tm, D) f32
    h = jnp.maximum(h + b1_ref[...], 0.0)                             # bias + ReLU in f32
    y = jnp.dot(h.astype(w2_ref.dtype), w2_ref[...],
                preferred_element_type=jnp.float32)                   # (tm, D) f32
    y = y + b2_ref[...]
    # Residual add in f32; single cast at the final store (v5e VPU has no bf16).
    o_ref[...] = (x.astype(jnp.float32) + y).astype(o_ref.dtype)


def _hidden_tiled_kernel(x_ref, w1_ref, b1_ref, w2_ref, b2_ref, o_ref, acc_ref):
    """(batch, hidden) grid: weight tiles streamed, f32 accumulator in VMEM scratch."""
    j = pl.program_id(1)
    x = x_ref[...]                                                    # (tm, D)
    h = jnp.dot(x.astype(w1_ref.dtype), w1_ref[...],
                preferred_element_type=jnp.float32)                   # (tm, th)
    h = jnp.maximum(h + b1_ref[...], 0.0)
    y = jnp.dot(h.astype(w2_ref.dtype), w2_ref[...],
                preferred_element_type=jnp.float32)                   # (tm, D)

    @pl.when(j == 0)
    def _():
        # Fold the residual and second bias into the accumulator init.
        acc_ref[...] = x.astype(jnp.float32) + b2_ref[...]

    acc_ref[...] += y

    @pl.when(j == pl.num_programs(1) - 1)
    def _():
        o_ref[...] = acc_ref[...].astype(o_ref.dtype)


# ----------------------------------------------------------------------------- wrapper


def _vmem_budget_bytes():
    try:
        cap = int(pltpu.get_tpu_info().vmem_capacity_bytes)
    except Exception:
        cap = 64 * 1024 * 1024          # conservative default: v7x per-TC VMEM
    return max(cap - 8 * 1024 * 1024, 16 * 1024 * 1024)


def _pick_hidden_tile(D):
    # Hidden tile must be a multiple of 128 (lane granule) and divide D so that no partial
    # weight blocks (with unspecified OOB-read contents) can contaminate the accumulation.
    for th in (512, 256, 128):
        if D % th == 0:
            return th
    return None


def _pick_batch_tile(B, tm_target):
    # >= 2 grid steps whenever B allows it (megacore sharding on v7x, and gives the x/out
    # double-buffer something to overlap); tile rounded to the 8-row sublane granule and
    # sized so any padding is < 8 rows per grid step instead of up to tm-1 rows.
    n = max(_cdiv(B, tm_target), 2 if B >= 16 else 1)
    tm = max(8, _round_up(_cdiv(B, n), 8))
    n = _cdiv(B, tm)
    return tm, n


@functools.partial(jax.jit, static_argnames=("tm_target", "weight_tile", "mxu_dtype"))
def residual_linear(x, w1, b1, w2, b2, *, tm_target=256, weight_tile=None, mxu_dtype=None):
    """x: (B, D). w1, w2: (D, D) in PyTorch (out, in) layout. b1, b2: (D,).

    mxu_dtype:   optional dtype (e.g. jnp.bfloat16) for the matmul operands only;
                 recommended on v5e/v6e when x/w arrive as f32. Epilogue stays f32.
    weight_tile: force the hidden-dim-tiled path with this tile (multiple of 128, divides D).
    """
    B, D = x.shape

    # One-time (in, out) weight transpose in HBM (amortized over the whole batch grid) so
    # both in-kernel matmuls are plain row-major MXU feeds -- no per-step weight transpose.
    w1t = w1.T
    w2t = w2.T
    if mxu_dtype is not None:
        w1t = w1t.astype(mxu_dtype)
        w2t = w2t.astype(mxu_dtype)
    b1r = b1.reshape(1, D).astype(jnp.float32)
    b2r = b2.reshape(1, D).astype(jnp.float32)

    xb = jnp.dtype(x.dtype).itemsize
    wb = jnp.dtype(w1t.dtype).itemsize

    tm, n_batch = _pick_batch_tile(B, tm_target)
    Bp = tm * n_batch
    xp = jnp.pad(x, ((0, Bp - B), (0, 0))) if Bp != B else x

    budget = _vmem_budget_bytes()

    # Resident-weight footprint: weights are fetched once (constant index_map) but the
    # pipeline reserves default double buffers, plus double-buffered x/out tiles and f32
    # intermediates.
    resident_need = (2 * 2 * D * D * wb
                     + 2 * 2 * D * 4
                     + 2 * 2 * tm * D * xb
                     + 3 * tm * D * 4)

    th = weight_tile if weight_tile is not None else _pick_hidden_tile(D)
    use_tiled = weight_tile is not None or (th is not None and resident_need > budget)

    cost = pl.CostEstimate(
        flops=4 * Bp * D * D,                                   # two DxD matmuls per row
        transcendentals=0,
        bytes_accessed=2 * Bp * D * xb + 2 * D * D * wb + 2 * D * 4,
    )

    if use_tiled:
        assert th is not None and D % th == 0 and th % 128 == 0, (
            "hidden-dim tiling needs a tile that is a multiple of 128 and divides D")
        n_hidden = D // th
        tiled_need = (2 * 2 * D * th * wb        # W1/W2 tiles, double-buffered
                      + 2 * (th + D) * 4         # bias tiles
                      + 2 * 2 * tm * D * xb      # x / out tiles, double-buffered
                      + tm * D * 4               # f32 accumulator scratch
                      + (tm * th + tm * D) * 4)  # f32 intermediates
        vmem_limit = int(min(budget, max(32 * 1024 * 1024, tiled_need * 5 // 4)))

        out = pl.pallas_call(
            _hidden_tiled_kernel,
            out_shape=jax.ShapeDtypeStruct((Bp, D), x.dtype),
            grid_spec=pltpu.PrefetchScalarGridSpec(
                num_scalar_prefetch=0,
                grid=(n_batch, n_hidden),
                in_specs=[
                    pl.BlockSpec((tm, D), lambda i, j: (i, 0)),    # x (kept across j)
                    pl.BlockSpec((D, th), lambda i, j: (0, j)),    # W1 (in, out) columns
                    pl.BlockSpec((1, th), lambda i, j: (0, j)),    # b1 slice
                    pl.BlockSpec((th, D), lambda i, j: (j, 0)),    # W2 (in, out) rows
                    pl.BlockSpec((1, D), lambda i, j: (0, 0)),     # b2
                ],
                out_specs=pl.BlockSpec((tm, D), lambda i, j: (i, 0)),
                scratch_shapes=[pltpu.VMEM((tm, D), jnp.float32)],
            ),
            compiler_params=pltpu.CompilerParams(
                dimension_semantics=("parallel", "arbitrary"),
                vmem_limit_bytes=vmem_limit,
            ),
            cost_estimate=cost,
        )(xp, w1t, b1r, w2t, b2r)
    else:
        vmem_limit = int(min(budget, max(32 * 1024 * 1024, resident_need * 5 // 4)))
        out = pl.pallas_call(
            _resident_kernel,
            out_shape=jax.ShapeDtypeStruct((Bp, D), x.dtype),
            grid_spec=pltpu.PrefetchScalarGridSpec(
                num_scalar_prefetch=0,
                grid=(n_batch,),
                in_specs=[
                    pl.BlockSpec((tm, D), lambda i: (i, 0)),       # x tile
                    pl.BlockSpec((D, D), lambda i: (0, 0)),        # W1 (in, out), resident
                    pl.BlockSpec((1, D), lambda i: (0, 0)),        # b1
                    pl.BlockSpec((D, D), lambda i: (0, 0)),        # W2 (in, out), resident
                    pl.BlockSpec((1, D), lambda i: (0, 0)),        # b2
                ],
                out_specs=pl.BlockSpec((tm, D), lambda i: (i, 0)),
            ),
            compiler_params=pltpu.CompilerParams(
                dimension_semantics=("parallel",),
                vmem_limit_bytes=vmem_limit,
            ),
            cost_estimate=cost,
        )(xp, w1t, b1r, w2t, b2r)

    return out[:B] if Bp != B else out


def residual_linear_ref(x, w1, b1, w2, b2):
    hp = jax.lax.Precision.HIGHEST
    h = jnp.maximum(jnp.dot(x, w1.T, precision=hp) + b1, 0.0)
    return x + jnp.dot(h, w2.T, precision=hp) + b2


if __name__ == "__main__":
    key = jax.random.PRNGKey(0)

    def make_params(k, B, D):
        kx, k1, k2, k3, k4 = jax.random.split(k, 5)
        bound = 1.0 / (D ** 0.5)     # PyTorch nn.Linear default init range
        x = jax.random.normal(kx, (B, D), dtype=jnp.float32)
        w1 = jax.random.uniform(k1, (D, D), jnp.float32, -bound, bound)
        b1 = jax.random.uniform(k2, (D,), jnp.float32, -bound, bound)
        w2 = jax.random.uniform(k3, (D, D), jnp.float32, -bound, bound)
        b2 = jax.random.uniform(k4, (D,), jnp.float32, -bound, bound)
        return x, w1, b1, w2, b2

    ka, kb = jax.random.split(key)

    # Case 1: resident-weight path, input-dtype (f32) MXU feed.
    x, w1, b1, w2, b2 = make_params(ka, 64, 128)
    out = jax.block_until_ready(residual_linear(x, w1, b1, w2, b2))
    ref = residual_linear_ref(x, w1, b1, w2, b2)
    assert out.shape == ref.shape
    assert jnp.allclose(out, ref, atol=1e-2, rtol=1e-2), "resident-weight path mismatch"

    # Case 2: hidden-dim-tiled path (forced, as auto-selected for large D on v7x's 64 MiB
    # VMEM) with bf16 MXU feed (the v5e/v6e recommendation); looser tolerance for bf16.
    x2, w12, b12, w22, b22 = make_params(kb, 32, 256)
    out2 = jax.block_until_ready(
        residual_linear(x2, w12, b12, w22, b22, weight_tile=128, mxu_dtype=jnp.bfloat16))
    ref2 = residual_linear_ref(x2, w12, b12, w22, b22)
    assert jnp.allclose(out2, ref2, atol=6e-2, rtol=6e-2), "hidden-tiled bf16 path mismatch"

    print("KERNEL_OK")
</pallas_src>

<mosaic_0001>
module attributes {stable_mosaic.version = 11 : i64} {
  func.func @_resident_kernel(%arg0: i32, %arg1: memref<32x128xf32, #tpu.memory_space<vmem>>, %arg2: memref<128x128xf32, #tpu.memory_space<vmem>>, %arg3: memref<1x128xf32, #tpu.memory_space<vmem>>, %arg4: memref<128x128xf32, #tpu.memory_space<vmem>>, %arg5: memref<1x128xf32, #tpu.memory_space<vmem>>, %arg6: memref<32x128xf32, #tpu.memory_space<vmem>>) attributes {dimension_semantics = [#tpu.dimension_semantics<parallel>], iteration_bounds = array<i64: 2>, scalar_prefetch = 0 : i64, scratch_operands = 0 : i64, tpu.core_type = #tpu.core_type<tc>, window_params = [{transform_indices = @transform_0, window_bounds = array<i64: 32, 128>}, {pipeline_mode = #tpu.pipeline_mode<synchronous>, transform_indices = @transform_1, window_bounds = array<i64: 128, 128>}, {pipeline_mode = #tpu.pipeline_mode<synchronous>, transform_indices = @transform_2, window_bounds = array<i64: 1, 128>}, {pipeline_mode = #tpu.pipeline_mode<synchronous>, transform_indices = @transform_3, window_bounds = array<i64: 128, 128>}, {pipeline_mode = #tpu.pipeline_mode<synchronous>, transform_indices = @transform_4, window_bounds = array<i64: 1, 128>}, {transform_indices = @transform_5, window_bounds = array<i64: 32, 128>}]} {
    %c0 = arith.constant 0 : index
    %c0_0 = arith.constant 0 : index
    %0 = vector.load %arg1[%c0, %c0_0] : memref<32x128xf32, #tpu.memory_space<vmem>>, vector<32x128xf32>
    %c0_1 = arith.constant 0 : index
    %c0_2 = arith.constant 0 : index
    %1 = vector.load %arg2[%c0_1, %c0_2] : memref<128x128xf32, #tpu.memory_space<vmem>>, vector<128x128xf32>
    %cst = arith.constant dense<0.000000e+00> : vector<32x128xf32>
    %2 = tpu.matmul %0, %1, %cst {dimension_numbers = #tpu.dot_dimension_numbers<[1], [0], [0], [1], [0, 0, 1, 1], [], []>} : vector<32x128xf32>, vector<128x128xf32>, vector<32x128xf32> -> vector<32x128xf32>
    %c0_3 = arith.constant 0 : index
    %c0_4 = arith.constant 0 : index
    %3 = vector.load %arg3[%c0_3, %c0_4] : memref<1x128xf32, #tpu.memory_space<vmem>>, vector<1x128xf32>
    %4 = vector.broadcast %3 : vector<1x128xf32> to vector<32x128xf32>
    %5 = arith.addf %2, %4 : vector<32x128xf32>
    %cst_5 = arith.constant 0.000000e+00 : f32
    %6 = vector.broadcast %cst_5 : f32 to vector<32x128xf32>
    %7 = arith.maximumf %5, %6 : vector<32x128xf32>
    %c0_6 = arith.constant 0 : index
    %c0_7 = arith.constant 0 : index
    %8 = vector.load %arg4[%c0_6, %c0_7] : memref<128x128xf32, #tpu.memory_space<vmem>>, vector<128x128xf32>
    %cst_8 = arith.constant dense<0.000000e+00> : vector<32x128xf32>
    %9 = tpu.matmul %7, %8, %cst_8 {dimension_numbers = #tpu.dot_dimension_numbers<[1], [0], [0], [1], [0, 0, 1, 1], [], []>} : vector<32x128xf32>, vector<128x128xf32>, vector<32x128xf32> -> vector<32x128xf32>
    %c0_9 = arith.constant 0 : index
    %c0_10 = arith.constant 0 : index
    %10 = vector.load %arg5[%c0_9, %c0_10] : memref<1x128xf32, #tpu.memory_space<vmem>>, vector<1x128xf32>
    %11 = vector.broadcast %10 : vector<1x128xf32> to vector<32x128xf32>
    %12 = arith.addf %9, %11 : vector<32x128xf32>
    %13 = arith.addf %0, %12 : vector<32x128xf32>
    %c0_11 = arith.constant 0 : index
    %c0_12 = arith.constant 0 : index
    %14 = vector.load %arg6[%c0_11, %c0_12] : memref<32x128xf32, #tpu.memory_space<vmem>>, vector<32x128xf32>
    tpu.vector_store %arg6[%c0_11, %c0_12], %13 {strides = array<i32>} : memref<32x128xf32, #tpu.memory_space<vmem>>, vector<32x128xf32>,
    return
  }
  func.func @transform_0(%arg0: i32) -> (i32, i32) {
    %c0_i32 = arith.constant 0 : i32
    %c0_i32_0 = arith.constant 0 : i32
    return %arg0, %c0_i32 : i32, i32
  }
  func.func @transform_1(%arg0: i32) -> (i32, i32) {
    %c0_i32 = arith.constant 0 : i32
    %c0_i32_0 = arith.constant 0 : i32
    %c0_i32_1 = arith.constant 0 : i32
    return %c0_i32, %c0_i32_0 : i32, i32
  }
  func.func @transform_2(%arg0: i32) -> (i32, i32) {
    %c0_i32 = arith.constant 0 : i32
    %c0_i32_0 = arith.constant 0 : i32
    %c0_i32_1 = arith.constant 0 : i32
    return %c0_i32, %c0_i32_0 : i32, i32
  }
  func.func @transform_3(%arg0: i32) -> (i32, i32) {
    %c0_i32 = arith.constant 0 : i32
    %c0_i32_0 = arith.constant 0 : i32
    %c0_i32_1 = arith.constant 0 : i32
    return %c0_i32, %c0_i32_0 : i32, i32
  }
  func.func @transform_4(%arg0: i32) -> (i32, i32) {
    %c0_i32 = arith.constant 0 : i32
    %c0_i32_0 = arith.constant 0 : i32
    %c0_i32_1 = arith.constant 0 : i32
    return %c0_i32, %c0_i32_0 : i32, i32
  }
  func.func @transform_5(%arg0: i32) -> (i32, i32) {
    %c0_i32 = arith.constant 0 : i32
    %c0_i32_0 = arith.constant 0 : i32
    return %arg0, %c0_i32 : i32, i32
  }
}

</mosaic_0001>

<bundles_post_ra>
// kernel: residual_linear.1
= control target key start
LH: loop header
LB: loop body
LE: loop exit
PB: predicated region body
PF: predicated region fallthrough
CT: control target
= control target key end

     0   :  { %10 = vsyncpa [#allocation3], 0  ;;  %s1081_s0 = inlined_call_operand.vmem [shape: f32[64,128], index: 0, kind: input, shape index: {}]   ;;  %s1082_s1 = inlined_call_operand.vmem [shape: f32[128,128], index: 1, kind: input, shape index: {}]   ;;  %s1083_s2 = inlined_call_operand.vmem [shape: f32[1,128], index: 2, kind: input, shape index: {}]   ;;  %s1084_s3 = inlined_call_operand.vmem [shape: f32[128,128], index: 3, kind: input, shape index: {}]   ;;  %s1085_s4 = inlined_call_operand.vmem [shape: f32[1,128], index: 4, kind: input, shape index: {}]   ;;  %s1086_s5 = inlined_call_operand.hbm [shape: f32[64,128], index: 5, kind: output, shape index: {}]  }
   0x1   :  { %12 = vsyncpa [#allocation3 + $0x1], 0  ;;  %s867_s18 = smov 0   ;;  %s869_s19 = smov 0  }
   0x2   :  { %s871_s20 = smov 0   ;;  %s873_s21 = smov 0  }
   0x3 LB: > { %s888_s22 = sadd.s32 4294967295, %s832_s21   ;;  %s534_s23 = sadd.s32 4294967294, %s832_s21   ;;  %s832_s21 = sphi %s873_s21, %s1092_s21   ;;  %s828_s20 = sphi %s871_s20, %s1091_s20   ;;  %s824_s19 = sphi %s869_s19, %s1090_s19   ;;  %s820_s18 = sphi %s867_s18, %s1089_s18  }
   0x4   : > { %s892_s24 = sadd.s32 1, %s832_s21   ;;  %s135_s25 = sadd.s32 1, %s828_s20 }
   0x5   : > { %s132_s26 = ssub.s32 %s832_s21, %s892_s24  ;;  %p145_p0 = scmp.ne.s32.totalorder %s828_s20, %s824_s19 }
   0x6   : > { %p133_p1 = scmp.eq.s32.totalorder %s132_s26, 0  ;;  %p146_p2 = scmp.eq.s32.totalorder %s888_s22, 1 }
   0x7   : > { %p151_p3 = scmp.ne.s32.totalorder %s824_s19, %s820_s18  ;;  %p152_p4 = scmp.eq.s32.totalorder %s534_s23, 1 }
   0x8   : > { %s903_s27 = scalar_select %p133_p1, %s828_s20, %s135_s25  }
   0x9   : > { %p905_p5 = por %p146_p2, %p145_p0  ;;  %p909_p6 = por %p152_p4, %p151_p3 }
   0xa   : > { %p537_p7 = scmp.ge.s32.totalorder %s832_s21, 1  ;;  %p191_p8 = scmp.lt.s32.totalorder %s832_s21, 3 }
   0xc   : > { %p192_p9 = pnand %p537_p7, %p191_p8 }
   0xd   : > { %v230_v0 = vld [vmem:[%s1082_s1] sm:$0xff] (!%p192_p9)  ;;  %v231_v1 = vld [vmem:[%s1082_s1 + $0x8] sm:$0xff] (!%p192_p9)  ;;  %v232_v2 = vld [vmem:[%s1082_s1 + $0x10] sm:$0xff] (!%p192_p9)  ;;  %s539_s11 = sshll.u32 (!%p192_p9), %s888_s22, 2  ;;  %s834_s9 = smov (!%p192_p9), [#allocation2]  }
   0xe   : > { %195 = sbr.rel (%p192_p9) target bundleno = 502 (0x1f6), region = 40  ;;  %v665_v3 = vpack.c.bf16 (!%p192_p9), %v231_v1, %v230_v0  ;;  %v233_v4 = vld [vmem:[%s1082_s1 + $0x18] sm:$0xff] (!%p192_p9)  ;;  %p220_p10 = scmp.lt.s32.totalorder (!%p192_p9), %s539_s11, 7  ;;  %v234_v6 = vld [vmem:[%s1082_s1 + $0x20] sm:$0xff] (!%p192_p9)  ;;  %v235_v7 = vld [vmem:[%s1082_s1 + $0x28] sm:$0xff] (!%p192_p9) }
   0xf   : > { %v669_v5 = vpack.c.bf16 (!%p192_p9), %v233_v4, %v232_v2  ;;  %v673_v8 = vpack.c.bf16 (!%p192_p9), %v235_v7, %v234_v6  ;;  %v236_v9 = vld [vmem:[%s1082_s1 + $0x30] sm:$0xff] (!%p192_p9)  ;;  %v342_v10 = vld [vmem:[%s1084_s3] sm:$0xff] (!%p192_p9)  ;;  %v343_v11 = vld [vmem:[%s1084_s3 + $0x8] sm:$0xff] (!%p192_p9)  ;;  %s774_s10 = sshll.u32 (!%p192_p9), %s834_s9, 4  ;;  %s775_s10 = int_to_ptr.vmem [resolvable:$false] %s774_s10 }
  0x10   : > { %666 = vmatprep.subr.bf16.mxu0 (!%p192_p9), %v665_v3  ;;  %v237_v12 = vld [vmem:[%s1082_s1 + $0x38] sm:$0xff] (!%p192_p9)  ;;  %v697_v13 = vpack.c.bf16 (!%p192_p9), %v343_v11, %v342_v10  ;;  %v344_v14 = vld [vmem:[%s1084_s3 + $0x10] sm:$0xff] (!%p192_p9)  ;;  %v346_v18 = vld [vmem:[%s1084_s3 + $0x20] sm:$0xff] (!%p192_p9)  ;;  %s776_s12 = scalar_lea.vmem (!%p192_p9), %s775_s10, 1024 }
  0x11   : > { %668 = vmatpush3.bf16.msra.mxu0 (!%p192_p9), %v665_v3  ;;  %v345_v15 = vld [vmem:[%s1084_s3 + $0x18] sm:$0xff] (!%p192_p9)  ;;  %v347_v19 = vld [vmem:[%s1084_s3 + $0x28] sm:$0xff] (!%p192_p9)  ;;  %v677_v20 = vpack.c.bf16 (!%p192_p9), %v237_v12, %v236_v9  ;;  %v238_v21 = vld [vmem:[%s1082_s1 + $0x40] sm:$0xff] (!%p192_p9) }
  0x12   : > { %670 = vmatprep.subr.bf16.mxu0 (!%p192_p9), %v669_v5  ;;  %v701_v17 = vpack.c.bf16 (!%p192_p9), %v345_v15, %v344_v14  ;;  %698 = vmatprep.subr.bf16.mxu1 (!%p192_p9), %v697_v13  ;;  %v239_v22 = vld [vmem:[%s1082_s1 + $0x48] sm:$0xff] (!%p192_p9)  ;;  %v705_v23 = vpack.c.bf16 (!%p192_p9), %v347_v19, %v346_v18  ;;  %v348_v24 = vld [vmem:[%s1084_s3 + $0x30] sm:$0xff] (!%p192_p9)  ;;  %v349_v25 = vld [vmem:[%s1084_s3 + $0x38] sm:$0xff] (!%p192_p9) }
  0x13   : > { %700 = vmatpush3.bf16.msra.mxu1 (!%p192_p9), %v697_v13  ;;  %v681_v26 = vpack.c.bf16 (!%p192_p9), %v239_v22, %v238_v21  ;;  %v240_v27 = vld [vmem:[%s1082_s1 + $0x50] sm:$0xff] (!%p192_p9)  ;;  %v241_v28 = vld [vmem:[%s1082_s1 + $0x58] sm:$0xff] (!%p192_p9)  ;;  %v709_v29 = vpack.c.bf16 (!%p192_p9), %v349_v25, %v348_v24  ;;  %v350_v30 = vld [vmem:[%s1084_s3 + $0x40] sm:$0xff] (!%p192_p9) }
  0x14   : > { %702 = vmatprep.subr.bf16.mxu1 (!%p192_p9), %v701_v17  ;;  %v351_v31 = vld [vmem:[%s1084_s3 + $0x48] sm:$0xff] (!%p192_p9)  ;;  %v685_v32 = vpack.c.bf16 (!%p192_p9), %v241_v28, %v240_v27  ;;  %v242_v33 = vld [vmem:[%s1082_s1 + $0x60] sm:$0xff] (!%p192_p9)  ;;  %v352_v36 = vld [vmem:[%s1084_s3 + $0x50] sm:$0xff] (!%p192_p9) }
  0x15   : > { %s1094_s11 = smov (!%p220_p10, %s539_s11), 7  ;;  %672 = vmatpush3.bf16.msra.mxu0 %v669_v5  ;;  %v243_v34 = vld [vmem:[%s1082_s1 + $0x68] sm:$0xff]  ;;  %v713_v35 = vpack.c.bf16 %v351_v31, %v350_v30  ;;  %v353_v37 = vld [vmem:[%s1084_s3 + $0x58] sm:$0xff]  ;;  %v244_v39 = vld [vmem:[%s1082_s1 + $0x70] sm:$0xff] }
  0x16   : > { %s540_s26 = sshll.u32 %s1094_s11, 3  ;;  %674 = vmatprep.subr.bf16.mxu0 %v673_v8  ;;  %v689_v38 = vpack.c.bf16 %v243_v34, %v242_v33  ;;  %v245_v40 = vld [vmem:[%s1082_s1 + $0x78] sm:$0xff]  ;;  %v717_v41 = vpack.c.bf16 %v353_v37, %v352_v36  ;;  %v354_v42 = vld [vmem:[%s1084_s3 + $0x60] sm:$0xff]  ;;  %v355_v43 = vld [vmem:[%s1084_s3 + $0x68] sm:$0xff] }
  0x17   : > { %s949_s14 = scalar_lea.vmem %s1081_s0, %s540_s26  ;;  %704 = vmatpush3.bf16.msra.mxu1 %v701_v17  ;;  %v693_v44 = vpack.c.bf16 %v245_v40, %v244_v39  ;;  %v721_v45 = vpack.c.bf16 %v355_v43, %v354_v42  ;;  %v356_v49 = vld [vmem:[%s1084_s3 + $0x70] sm:$0xff]  ;;  %v357_v50 = vld [vmem:[%s1084_s3 + $0x78] sm:$0xff]  ;;  %v541_v52 = vld [vmem:[%s1083_s2] ss:$0 sm:$0xff]  ;;  %s548_s26 = sshll.u32 %s888_s22, 9 }
  0x18   : > { %v958_v16 = vld [vmem:[%s949_s14] sm:$0xff]  ;;  %706 = vmatprep.subr.bf16.mxu1 %v705_v23  ;;  %v227_v46 = vld [vmem:[%s949_s14 + $0x8] sm:$0xff]  ;;  %v228_v47 = vld [vmem:[%s949_s14 + $0x10] sm:$0xff]  ;;  %v725_v51 = vpack.c.bf16 %v357_v50, %v356_v49  ;;  %s1038_s7 = scalar_lea.hbm %s1086_s5, %s548_s26 }
  0x19   : > { %621 = vmatprep.mubr.f32.mxu0 %v958_v16  ;;  %676 = vmatpush3.bf16.msra.mxu0 %v673_v8  ;;  %v229_v48 = vld [vmem:[%s949_s14 + $0x18] sm:$0xff]  ;;  %s216_s14 = sand.u32 1, %s824_s19   ;;  %v542_v1 = vld [vmem:[%s1085_s4] ss:$0 sm:$0xff] }
  0x1a   : > { %678 = vmatprep.subr.bf16.mxu0 %v677_v20  ;;  %s538_s17 = sshll.u32 %s216_s14, 5  ;;  %s1040_s22 = scalar_lea.sflag [#allocation3], %s216_s14 }
  0x1b   : > { %708 = vmatpush3.bf16.msra.mxu1 %v705_v23  ;;  %s218_s23 = scalar_lea.vmem [#allocation2], %s538_s17 }
  0x1c   : > { %710 = vmatprep.subr.bf16.mxu1 %v709_v29  ;;  %s472_s25 = sshll.u32 %s218_s23, 4  ;;  %s1033_s25 = int_to_ptr.vmem [resolvable:$true] %s472_s25 }
  0x1d   : > { %680 = vmatpush3.bf16.msra.mxu0 %v677_v20  ;;  %s770_s8 = scalar_lea.vmem %s1033_s25, 512  ;;  %p777_p0 = scmp.lt.s32.totalorder %s1033_s25, %s775_s10 }
  0x1e   : > { %682 = vmatprep.subr.bf16.mxu0 %v681_v26  ;;  %p771_p11 = scmp.ne.s32.totalorder %s1033_s25, %s770_s8  ;;  %p778_p1 = scmp.lt.s32.totalorder %s776_s12, %s770_s8 }
  0x1f   : > { %712 = vmatpush3.bf16.msra.mxu1 %v709_v29 }
  0x20   : > { %714 = vmatprep.subr.bf16.mxu1 %v713_v35  ;;  %p772_p12 = pnand %p771_p11, %p905_p5  ;;  %p779_p2 = por %p778_p1, %p777_p0 }
  0x21   : > { %684 = vmatpush3.bf16.msra.mxu0 %v681_v26 }
  0x22   : > { %686 = vmatprep.subr.bf16.mxu0 %v685_v32  ;;  %p773_p13 = pneg %p772_p12 }
  0x23   : > { %716 = vmatpush3.bf16.msra.mxu1 %v713_v35 }
  0x24   : > { %718 = vmatprep.subr.bf16.mxu1 %v717_v41  ;;  %p780_p3 = pnand %p779_p2, %p773_p13 }
  0x25   : > { %688 = vmatpush3.bf16.msra.mxu0 %v685_v32 }
  0x26   : > { %690 = vmatprep.subr.bf16.mxu0 %v689_v38 }
  0x27   : > { %720 = vmatpush3.bf16.msra.mxu1 %v717_v41 }
  0x28   : > { %722 = vmatprep.subr.bf16.mxu1 %v721_v45 }
  0x29   : > { %692 = vmatpush3.bf16.msra.mxu0 %v689_v38 }
  0x2a   : > { %694 = vmatprep.subr.bf16.mxu0 %v693_v44 }
  0x2b   : > { %724 = vmatpush3.bf16.msra.mxu1 %v721_v45 }
  0x2c   : > { %726 = vmatprep.subr.bf16.mxu1 %v725_v51 }
  0x2d   : > { %696 = vmatpush3.bf16.msra.mxu0 %v693_v44 }
  0x2f   : > { %728 = vmatpush3.bf16.msra.mxu1 %v725_v51 }
  0x30   : > { %622 = vmatmul.mubr.f32.vlgmr.msra.gmra.mrb[0].mxu0 %v227_v46 }
  0x31   : > { %624 = vmatprep.mubr.f32.mxu0 %v228_v47 }
  0x34   : > { %625 = vmatmul.mubr.f32.gmra.mrb[2].mxu0 %v229_v48 }
 0x103   : > { %v623_v53 = vpop.f32.mrb[0].mxu0 }
 0x104   : > { %v325_v54 = vadd.f32 %v623_v53, %v541_v52  ;;  %v319_v55 = vpop.f32.mrb[1].mxu0 }
 0x105   : > { %v320_v56 = vadd.f32 %v541_v52, %v319_v55 }
 0x106   : > { %v339_v59 = vmax.f32 %v325_v54, 0.0 }
 0x107   : > { %v626_v57 = vpop.f32.mrb[2].mxu0  ;;  %v338_v58 = vmax.f32 %v320_v56, 0.0 }
 0x108   : > { %v335_v60 = vadd.f32 %v626_v57, %v541_v52  ;;  %v329_v61 = vpop.f32.mrb[3].mxu0 }
 0x109   : > { %v330_v62 = vadd.f32 %v541_v52, %v329_v61  ;;  %659 = vmatprep.mubr.f32.mxu1 %v338_v58 }
 0x10a   : > { %660 = vmatmul.mubr.f32.vlgmr.msra.gmra.mrb[0].mxu1 %v339_v59  ;;  %v341_v0 = vmax.f32 %v335_v60, 0.0 }
 0x10b   : > { %v340_v63 = vmax.f32 %v330_v62, 0.0 }
 0x10d   : > { %662 = vmatprep.mubr.f32.mxu1 %v340_v63 }
 0x10e   : > { %663 = vmatmul.mubr.f32.gmra.mrb[2].mxu1 %v341_v0 }
 0x1dd   : > { %v661_v2 = vpop.f32.mrb[0].mxu1 }
 0x1de   : > { %v437_v3 = vadd.f32 %v661_v2, %v542_v1  ;;  %v431_v4 = vpop.f32.mrb[1].mxu1 }
 0x1df   : > { %v432_v5 = vadd.f32 %v542_v1, %v431_v4 }
 0x1e0   : > { %v451_v6 = vadd.f32 %v437_v3, %v227_v46 }
 0x1e1   : > { %v450_v7 = vadd.f32 %v432_v5, %v958_v16  ;;  %v664_v8 = vpop.f32.mrb[2].mxu1 }
 0x1e2   : > { %455 = vst [vmem:[%s218_s23 + $0x8] sm:$0xff] %v451_v6  ;;  %v447_v9 = vadd.f32 %v664_v8, %v542_v1  ;;  %v441_v10 = vpop.f32.mrb[3].mxu1 }
 0x1e3   : > { %454 = vst [vmem:[%s218_s23] sm:$0xff] %v450_v7  ;;  %v442_v11 = vadd.f32 %v542_v1, %v441_v10 }
 0x1e4   : > { %v453_v12 = vadd.f32 %v447_v9, %v229_v48 }
 0x1e5   : > { %v452_v13 = vadd.f32 %v442_v11, %v228_v47 }
 0x1e6   : > { %457 = vst [vmem:[%s218_s23 + $0x18] sm:$0xff] %v453_v12 }
 0x1e7   : > { %456 = vst [vmem:[%s218_s23 + $0x10] sm:$0xff] %v452_v13 }
 0x1e8   : > { %783 = shalt.err (!%p780_p3)
}
 0x1e9   : > { %s784_s13 = scalar_lea.hbm %s1038_s7, 512  ;;  %s788_s15 = scalar_lea.hbm %s1086_s5, 1024 }
 0x1ea   : > { %p785_p4 = scmp.ne.s32.totalorder %s1038_s7, %s784_s13  ;;  %p789_p9 = scmp.lt.u32.totalorder %s1038_s7, %s1086_s5 }
 0x1eb   : > { %p790_p10 = scmp.lt.u32.totalorder %s788_s15, %s784_s13  ;;  %p792_p12 = scmp.lt.u32.totalorder %s784_s13, %s1038_s7 }
 0x1ec   : > { %p786_p7 = pnand %p785_p4, %p905_p5 }
 0x1ed   : > { %p791_p11 = por %p790_p10, %p789_p9 }
 0x1ee   : > { %p787_p8 = pneg %p786_p7 }
 0x1ef   : > { %p793_p13 = por %p792_p12, %p791_p11 }
 0x1f1   : > { %p794_p0 = pnand %p793_p13, %p787_p8 }
 0x1f3   : > { %797 = shalt.err (!%p794_p0)
}
 0x1f4   : > { %s835_s23 = smov 128   ;;  %s836_s26 = smov 8  }
 0x1f5   : > { %729 = dma.vmem_to_hbm [thread:$0]  (%p905_p5), %s1033_s25, 512, %s1038_s7, %s1040_s22, %s835_s23, %s835_s23, %s836_s26  }
 0x1f6 PF: > { %p735_p1 = scmp.ge.s32.totalorder %s832_s21, 2  ;;  %s487_s30 = sand.u32 1, %s820_s18  }
 0x1f7   : > { %s488_s6 = scalar_lea.sflag [#allocation3], %s487_s30 }
 0x1f8   : > { %p732_p2 = pnand %p735_p1, %p909_p6 }
 0x1fa   : > { %815 = dma.done.wait (!%p732_p2), %s488_s6, 512  }
 0x1fb   : > { %817 = vsyncadd (!%p732_p2), %s488_s6, 4294966784  ;;  %p15_p3 = scmp.ge.s32.totalorder %s892_s24, 4   ;;  %s1089_s18 = smov %s824_s19 }
 0x1fc   : > { %s1090_s19 = smov %s828_s20  ;;  %s1091_s20 = smov %s903_s27 }
 0x1fd   : > { %s1092_s21 = smov %s892_s24  ;;  %17 = sbr.rel (!%p15_p3) target bundleno = 3 (0x3), region = 75 }
 0x204   :  { %493 = vsyncpa [#allocation3], 1 }
 0x205   :  { %495 = vsyncpa [#allocation3 + $0x1], 1 }

</bundles_post_ra>
